<compile_context>
chip_gen: v6e
topology: v6e:2x2x1
jax: 0.10.0
libtpu: 0.0.40
codegen_flags: <defaults>
</compile_context>

<pallas_src>
import functools

import jax
import jax.numpy as jnp
from jax.experimental import pallas as pl
from jax.experimental.pallas import tpu as pltpu


def _poly_kernel(x_ref, wt_ref, o_ref):
    """Grid = (M//tm, N//tn, K//tk); k (reduction) is last / "arbitrary".

    x_ref:  (tm, tk) f32, strictly positive (padding is 1.0 -> log == 0).
    wt_ref: (tk, tn) f32, W.T tile (padding is 0.0).
    o_ref:  (tm, tn) f32, resident across k (same (i, j) block every k step).
    """
    k = pl.program_id(2)

    @pl.when(k == 0)
    def _():
        o_ref[...] = jnp.zeros_like(o_ref)

    # log on the VPU/EUP (co-issues with MXU/DMA), matmul on the MXU, f32 acc.
    o_ref[...] += jnp.dot(
        jnp.log(x_ref[...]), wt_ref[...], preferred_element_type=jnp.float32
    )

    @pl.when(k == pl.num_programs(2) - 1)
    def _():
        # exp only after the full K reduction (exp of a partial sum is wrong).
        o_ref[...] = jnp.exp(o_ref[...])


def _round_up(x, m):
    return (x + m - 1) // m * m


@functools.partial(
    jax.jit, static_argnames=("tm_max", "tn_max", "tk_max", "use_xla_for_tiny")
)
def make_polynomial_forward(
    x, weight, *, tm_max=512, tn_max=512, tk_max=1024, use_xla_for_tiny=False
):
    """x: (B, inputSize) f32 (>0), weight: (outputSize, inputSize) f32
    -> (B, outputSize) f32 == exp(log(x) @ weight.T)."""
    B, In = x.shape
    Out, In2 = weight.shape
    assert In == In2

    # Optional bypass: for tiny problems the padding copies + launch overhead
    # dominate and plain XLA is strictly faster.  Off by default here so the
    # Pallas kernel is exercised.
    if use_xla_for_tiny and (B * In * Out) < (1 << 18):
        return jnp.exp(jnp.log(x.astype(jnp.float32)) @ weight.astype(jnp.float32).T)

    # Padded sizes / tile sizes satisfying the (8, 128) tiling constraint.
    M0 = _round_up(B, 8)
    tm = min(tm_max, M0)
    M = _round_up(M0, tm)

    K0 = _round_up(In, 128)
    tk = min(tk_max, K0)
    K = _round_up(K0, tk)

    N0 = _round_up(Out, 128)
    tn = min(tn_max, N0)
    N = _round_up(N0, tn)

    # v7x has 2 TensorCores: if the parallel (i, j) grid collapsed to a single
    # tile but the batch is splittable, halve the i tile so both cores get work.
    if (M // tm) * (N // tn) == 1 and M0 >= 16:
        tm = _round_up(M0 // 2, 8)
        M = _round_up(M0, tm)

    grid = (M // tm, N // tn, K // tk)

    # Single fused pad expressions (no separate log_x / wt temporaries).
    # x padded with 1.0 so log(pad) == 0; W.T padded with 0.0 -> padding
    # contributes nothing to the reduction.
    x_p = jnp.ones((M, K), jnp.float32).at[:B, :In].set(x.astype(jnp.float32))
    wt_p = jnp.zeros((K, N), jnp.float32).at[:In, :Out].set(
        weight.astype(jnp.float32).T
    )
    # TODO(synk): if `weight` is reused across calls, build wt_p once outside
    # the jitted wrapper instead of per call.

    out_p = pl.pallas_call(
        _poly_kernel,
        out_shape=jax.ShapeDtypeStruct((M, N), jnp.float32),
        grid_spec=pltpu.PrefetchScalarGridSpec(
            num_scalar_prefetch=0,
            grid=grid,
            in_specs=[
                pl.BlockSpec((tm, tk), lambda i, j, k: (i, k)),
                pl.BlockSpec((tk, tn), lambda i, j, k: (k, j)),
            ],
            # Same (i, j) block for all k -> output tile stays resident in VMEM
            # across the reduction; it doubles as the accumulator.
            out_specs=pl.BlockSpec((tm, tn), lambda i, j, k: (i, j)),
        ),
        compiler_params=pltpu.CompilerParams(
            # i/j are independent (megacore-shardable); only k carries state.
            dimension_semantics=("parallel", "parallel", "arbitrary"),
        ),
    )(x_p, wt_p)

    # Padded rows/cols hold exp(0) = 1; slice them away.
    return out_p[:B, :Out]


if __name__ == "__main__":
    key = jax.random.PRNGKey(0)
    k_x, k_w, k_x2, k_w2 = jax.random.split(key, 4)

    # --- small shapes matching the module's typical use ---------------------
    B, inputSize, outputSize = 8, 32, 16
    # x must be strictly positive (torch.log); sample in (0.5, 1.5).
    x = jax.random.uniform(
        k_x, (B, inputSize), dtype=jnp.float32, minval=0.5, maxval=1.5
    )
    # Mirrors Tensor(outputSize, inputSize).uniform_(-1, 1).
    weight = jax.random.uniform(
        k_w, (outputSize, inputSize), dtype=jnp.float32, minval=-1.0, maxval=1.0
    )

    out = jax.block_until_ready(make_polynomial_forward(x, weight))
    ref = jnp.exp(jnp.log(x) @ weight.T)
    assert out.shape == (B, outputSize)
    assert jnp.allclose(out, ref, rtol=1e-4, atol=1e-4), "mismatch vs reference (small)"

    # --- unaligned shapes with small tiles to exercise the multi-tile grid
    #     (padding, k-accumulation into o_ref, multi i/j tiles) ---------------
    B2, In2_, Out2 = 72, 300, 260
    x2 = jax.random.uniform(k_x2, (B2, In2_), dtype=jnp.float32, minval=0.5, maxval=1.5)
    w2 = jax.random.uniform(k_w2, (Out2, In2_), dtype=jnp.float32, minval=-1.0, maxval=1.0)
    out2 = jax.block_until_ready(
        make_polynomial_forward(x2, w2, tm_max=32, tn_max=128, tk_max=128)
    )
    ref2 = jnp.exp(jnp.log(x2) @ w2.T)
    assert out2.shape == (B2, Out2)
    assert jnp.allclose(out2, ref2, rtol=1e-4, atol=1e-4), "mismatch vs reference (tiled)"

    print("KERNEL_OK")
</pallas_src>

<mosaic_0001>
module attributes {stable_mosaic.version = 11 : i64} {
  func.func @_poly_kernel(%arg0: i32, %arg1: i32, %arg2: i32, %arg3: memref<8x128xf32, #tpu.memory_space<vmem>>, %arg4: memref<128x128xf32, #tpu.memory_space<vmem>>, %arg5: memref<8x128xf32, #tpu.memory_space<vmem>>) attributes {dimension_semantics = [#tpu.dimension_semantics<parallel>, #tpu.dimension_semantics<parallel>, #tpu.dimension_semantics<arbitrary>], iteration_bounds = array<i64: 1, 1, 1>, scalar_prefetch = 0 : i64, scratch_operands = 0 : i64, tpu.core_type = #tpu.core_type<tc>, window_params = [{transform_indices = @transform_0, window_bounds = array<i64: 8, 128>}, {transform_indices = @transform_1, window_bounds = array<i64: 128, 128>}, {transform_indices = @transform_2, window_bounds = array<i64: 8, 128>}]} {
    %c0_i32 = arith.constant 0 : i32
    %0 = arith.cmpi eq, %arg2, %c0_i32 : i32
    %1 = arith.extui %0 : i1 to i32
    %c0_i32_0 = arith.constant 0 : i32
    %2 = arith.cmpi ne, %1, %c0_i32_0 : i32
    scf.if %2 {
      %cst_10 = arith.constant 0.000000e+00 : f32
      %13 = vector.broadcast %cst_10 : f32 to vector<8x128xf32>
      %c0_11 = arith.constant 0 : index
      %c0_12 = arith.constant 0 : index
      %14 = vector.load %arg5[%c0_11, %c0_12] : memref<8x128xf32, #tpu.memory_space<vmem>>, vector<8x128xf32>
      tpu.vector_store %arg5[%c0_11, %c0_12], %13 {strides = array<i32>} : memref<8x128xf32, #tpu.memory_space<vmem>>, vector<8x128xf32>,
    } else {
    }
    %c0 = arith.constant 0 : index
    %c0_1 = arith.constant 0 : index
    %3 = vector.load %arg5[%c0, %c0_1] : memref<8x128xf32, #tpu.memory_space<vmem>>, vector<8x128xf32>
    %c0_2 = arith.constant 0 : index
    %c0_3 = arith.constant 0 : index
    %4 = vector.load %arg3[%c0_2, %c0_3] : memref<8x128xf32, #tpu.memory_space<vmem>>, vector<8x128xf32>
    %5 = math.log %4 : vector<8x128xf32>
    %c0_4 = arith.constant 0 : index
    %c0_5 = arith.constant 0 : index
    %6 = vector.load %arg4[%c0_4, %c0_5] : memref<128x128xf32, #tpu.memory_space<vmem>>, vector<128x128xf32>
    %cst = arith.constant dense<0.000000e+00> : vector<8x128xf32>
    %7 = tpu.matmul %5, %6, %cst {dimension_numbers = #tpu.dot_dimension_numbers<[1], [0], [0], [1], [0, 0, 1, 1], [], []>} : vector<8x128xf32>, vector<128x128xf32>, vector<8x128xf32> -> vector<8x128xf32>
    %8 = arith.addf %3, %7 : vector<8x128xf32>
    %c0_6 = arith.constant 0 : index
    %c0_7 = arith.constant 0 : index
    %9 = vector.load %arg5[%c0_6, %c0_7] : memref<8x128xf32, #tpu.memory_space<vmem>>, vector<8x128xf32>
    tpu.vector_store %arg5[%c0_6, %c0_7], %8 {strides = array<i32>} : memref<8x128xf32, #tpu.memory_space<vmem>>, vector<8x128xf32>,
    %c0_i32_8 = arith.constant 0 : i32
    %10 = arith.cmpi eq, %arg2, %c0_i32_8 : i32
    %11 = arith.extui %10 : i1 to i32
    %c0_i32_9 = arith.constant 0 : i32
    %12 = arith.cmpi ne, %11, %c0_i32_9 : i32
    scf.if %12 {
      %c0_10 = arith.constant 0 : index
      %c0_11 = arith.constant 0 : index
      %13 = vector.load %arg5[%c0_10, %c0_11] : memref<8x128xf32, #tpu.memory_space<vmem>>, vector<8x128xf32>
      %14 = math.exp %13 : vector<8x128xf32>
      %c0_12 = arith.constant 0 : index
      %c0_13 = arith.constant 0 : index
      %15 = vector.load %arg5[%c0_12, %c0_13] : memref<8x128xf32, #tpu.memory_space<vmem>>, vector<8x128xf32>
      tpu.vector_store %arg5[%c0_12, %c0_13], %14 {strides = array<i32>} : memref<8x128xf32, #tpu.memory_space<vmem>>, vector<8x128xf32>,
    } else {
    }
    return
  }
  func.func @transform_0(%arg0: i32, %arg1: i32, %arg2: i32) -> (i32, i32) {
    %c0_i32 = arith.constant 0 : i32
    return %arg0, %arg2 : i32, i32
  }
  func.func @transform_1(%arg0: i32, %arg1: i32, %arg2: i32) -> (i32, i32) {
    %c0_i32 = arith.constant 0 : i32
    return %arg2, %arg1 : i32, i32
  }
  func.func @transform_2(%arg0: i32, %arg1: i32, %arg2: i32) -> (i32, i32) {
    %c0_i32 = arith.constant 0 : i32
    return %arg0, %arg1 : i32, i32
  }
}

</mosaic_0001>

<bundles_post_ra>
// kernel: make_polynomial_forward.1
= control target key start
LH: loop header
LB: loop body
LE: loop exit
PB: predicated region body
PF: predicated region fallthrough
CT: control target
= control target key end

     0   :  { %v211_v1 = vmov 0.0   ;;  %vm212_vm0 = vmmov 0   ;;  %s283_s0 = inlined_call_operand.vmem [shape: f32[8,128], index: 0, kind: input, shape index: {}]   ;;  %s284_s1 = inlined_call_operand.vmem [shape: f32[128,128], index: 1, kind: input, shape index: {}]   ;;  %s285_s2 = inlined_call_operand.hbm [shape: f32[8,128], index: 2, kind: output, shape index: {}]  }
   0x1   :  { %v36_v0 = vld [vmem:[%s284_s1 + $0x78] sm:$0xff]  ;;  %147 = vmatprep.subr.mxu0 %v211_v1  ;;  %v35_v2 = vld [vmem:[%s284_s1 + $0x70] sm:$0xff]  ;;  %179 = vmatprep.mubr.msk.f32.mxu0 %vm212_vm0, %v211_v1  ;;  %v34_v3 = vld [vmem:[%s284_s1 + $0x68] sm:$0xff] }
   0x2   :  { %148 = vmatpush3.msra.mxu0 %v36_v0  ;;  %v33_v4 = vld [vmem:[%s284_s1 + $0x60] sm:$0xff] }
   0x3   :  { %149 = vmatprep.subr.mxu0 %v211_v1 }
   0x4   :  { %150 = vmatpush3.msra.mxu0 %v35_v2 }
   0x5   :  { %151 = vmatprep.subr.mxu0 %v211_v1 }
   0x6   :  { %7 = vsyncpa [#allocation3], 0  ;;  %152 = vmatpush3.msra.mxu0 %v34_v3  ;;  %v32_v5 = vld [vmem:[%s284_s1 + $0x58] sm:$0xff]  ;;  %v31_v6 = vld [vmem:[%s284_s1 + $0x50] sm:$0xff]  ;;  %s213_s14 = smov [#allocation2]  }
   0x7   :  { %153 = vmatprep.subr.mxu0 %v211_v1  ;;  %v18_v7 = vld [vmem:[%s283_s0] sm:$0xff]  ;;  %v30_v8 = vld [vmem:[%s284_s1 + $0x48] sm:$0xff]  ;;  %v28_v10 = vld [vmem:[%s284_s1 + $0x38] sm:$0xff]  ;;  %s122_s15 = sshll.u32 %s213_s14, 4  ;;  %s123_s15 = int_to_ptr.vmem [resolvable:$true] %s122_s15 }
   0x8   :  { %154 = vmatpush3.msra.mxu0 %v33_v4  ;;  %v29_v9 = vld [vmem:[%s284_s1 + $0x40] sm:$0xff]  ;;  %185 = vlog2.f32 %v18_v7  ;;  %v27_v11 = vld [vmem:[%s284_s1 + $0x30] sm:$0xff]  ;;  %v26_v12 = vld [vmem:[%s284_s1 + $0x28] sm:$0xff]  ;;  %s189_s16 = scalar_lea.vmem %s123_s15, 128  ;;  %p194_p1 = scmp.lt.s32.totalorder %s123_s15, %s123_s15 }
   0x9   :  { %155 = vmatprep.subr.mxu0 %v211_v1  ;;  %v25_v13 = vld [vmem:[%s284_s1 + $0x20] sm:$0xff]  ;;  %v24_v14 = vld [vmem:[%s284_s1 + $0x18] sm:$0xff]  ;;  %v23_v15 = vld [vmem:[%s284_s1 + $0x10] sm:$0xff]  ;;  %p190_p0 = scmp.ne.s32.totalorder %s123_s15, %s189_s16  ;;  %p195_p2 = scmp.lt.s32.totalorder %s189_s16, %s189_s16 }
   0xa   :  { %156 = vmatpush3.msra.mxu0 %v32_v5  ;;  %v22_v17 = vld [vmem:[%s284_s1 + $0x8] sm:$0xff]  ;;  %v21_v18 = vld [vmem:[%s284_s1] sm:$0xff] }
   0xb   :  { %157 = vmatprep.subr.mxu0 %v211_v1  ;;  %p196_p3 = por %p195_p2, %p194_p1 }
   0xc   :  { %158 = vmatpush3.msra.mxu0 %v31_v6 }
   0xd   :  { %159 = vmatprep.subr.mxu0 %v211_v1  ;;  %p197_p4 = pnand %p196_p3, %p190_p0 }
   0xe   :  { %160 = vmatpush3.msra.mxu0 %v30_v8 }
   0xf   :  { %161 = vmatprep.subr.mxu0 %v211_v1 }
  0x10   :  { %162 = vmatpush3.msra.mxu0 %v29_v9 }
  0x11   :  { %163 = vmatprep.subr.mxu0 %v211_v1 }
  0x12   :  { %164 = vmatpush3.msra.mxu0 %v28_v10 }
  0x13   :  { %165 = vmatprep.subr.mxu0 %v211_v1 }
  0x14   :  { %166 = vmatpush3.msra.mxu0 %v27_v11 }
  0x15   :  { %167 = vmatprep.subr.mxu0 %v211_v1  ;;  %v186_v16 = vpop.eup %185 }
  0x16   :  { %168 = vmatpush3.msra.mxu0 %v26_v12  ;;  %v20_v19 = vmul.f32 0.6931472, %v186_v16 }
  0x17   :  { %169 = vmatprep.subr.mxu0 %v211_v1 }
  0x18   :  { %170 = vmatpush3.msra.mxu0 %v25_v13 }
  0x19   :  { %171 = vmatprep.subr.mxu0 %v211_v1 }
  0x1a   :  { %172 = vmatpush3.msra.mxu0 %v24_v14 }
  0x1b   :  { %173 = vmatprep.subr.mxu0 %v211_v1 }
  0x1c   :  { %174 = vmatpush3.msra.mxu0 %v23_v15 }
  0x1d   :  { %175 = vmatprep.subr.mxu0 %v211_v1 }
  0x1e   :  { %176 = vmatpush3.msra.mxu0 %v22_v17 }
  0x1f   :  { %177 = vmatprep.subr.mxu0 %v211_v1 }
  0x20   :  { %178 = vmatpush3.msra.mxu0 %v21_v18 }
  0x21   :  { %180 = vmatmul.mubr.f32.vlgmr.msra.gmra.mxu0 %v20_v19 }
  0xe1   :  { %v103_v20 = vpop.f32.mrf.mxu0 }
  0xe2   :  { %v113_v22 = vmul.f32 1.442695, %v103_v20 }
  0xe3   :  { %v181_v21 = vpop.f32.mrf.mxu0 }
  0xe4   :  { %187 = vpow2.f32 %v113_v22 }
  0xf1   :  { %v188_v23 = vpop.eup %187 }
  0xf2   :  { %115 = vst [vmem:[#allocation2] sm:$0xff] %v188_v23 }
  0xf3   :  { %200 = shalt.err (!%p197_p4)
}
  0xf4   :  { %125 = dma.vmem_to_hbm [thread:$0]  %s123_s15, 128, %s285_s2, [#allocation3]  }
  0xf5   :  { %209 = dma.done.wait [#allocation3], 128  }
  0xf6   :  { %210 = vsyncadd [#allocation3], 4294967168 }
  0xf7   :  { %129 = vsyncpa [#allocation3], 1 }

</bundles_post_ra>
